<compile_context>
chip_gen: v5e
topology: v5e:2x2
jax: 0.10.0
libtpu: 0.0.40
codegen_flags: <defaults>
</compile_context>

<pallas_src>
import functools

import jax
import jax.numpy as jnp
from jax.experimental import pallas as pl
from jax.experimental.pallas import tpu as pltpu


def _select_last_col_kernel(col, x_ref, o_ref):
    # x_ref: full (R, C) array in VMEM, o_ref: full (R, 1) output in VMEM.
    # `col` is a static Python int -> static lane slice, folded at trace time.
    o_ref[...] = x_ref[:, col:col + 1]


def select_int_neg_dim(x: jax.Array, dim: int = -1, index: int = -1) -> jax.Array:
    """Equivalent of torch.select(x, dim=-1, index=-1) for 2D x."""
    assert x.ndim == 2, "expects a rank-2 input"
    # Normalize negative dim / index (module uses dim=-1, index=-1).
    dim = dim % x.ndim
    assert dim == 1, "this kernel implements select along the last dim only"
    R, C = x.shape
    col = index % C
    assert 0 <= col < C

    kernel = functools.partial(_select_last_col_kernel, col)

    # Gridless pallas_call: no software pipeline, no per-step epilogue.
    # The full (tiny) input and output live in VMEM for the single invocation.
    out_2d = pl.pallas_call(
        kernel,
        out_shape=jax.ShapeDtypeStruct((R, 1), x.dtype),
        in_specs=[pl.BlockSpec(memory_space=pltpu.MemorySpace.VMEM)],
        out_specs=pl.BlockSpec(memory_space=pltpu.MemorySpace.VMEM),
    )(x)

    # Glue: drop the trailing singleton dim to match torch.select's rank-1 output.
    return out_2d.reshape(R)


if __name__ == "__main__":
    key = jax.random.PRNGKey(0)
    # Static shape from the module annotation: ([5, 5], torch.int64).
    R, C = 5, 5
    x = jax.random.randint(key, (R, C), minval=-1000, maxval=1000, dtype=jnp.int32)

    y = select_int_neg_dim(x, dim=-1, index=-1)
    jax.block_until_ready(y)

    # Correctness check against reference semantics x[:, -1].
    expected = x[:, -1]
    assert y.shape == (R,), y.shape
    assert y.dtype == x.dtype
    assert bool(jnp.all(y == expected)), "mismatch vs reference select"

    print("KERNEL_OK")
</pallas_src>

<mosaic_0001>
module attributes {stable_mosaic.version = 11 : i64} {
  func.func @_select_last_col_kernel(%arg0: memref<5x5xi32, #tpu.memory_space<vmem>>, %arg1: memref<5x1xi32, #tpu.memory_space<vmem>>) attributes {dimension_semantics = [], scalar_prefetch = 0 : i64, scratch_operands = 0 : i64, tpu.core_type = #tpu.core_type<tc>} {
    %c0 = arith.constant 0 : index
    %c4 = arith.constant 4 : index
    %0 = vector.load %arg0[%c0, %c4] : memref<5x5xi32, #tpu.memory_space<vmem>>, vector<5x1xi32>
    %c0_0 = arith.constant 0 : index
    %c0_1 = arith.constant 0 : index
    %1 = vector.load %arg1[%c0_0, %c0_1] : memref<5x1xi32, #tpu.memory_space<vmem>>, vector<5x1xi32>
    tpu.vector_store %arg1[%c0_0, %c0_1], %0 {strides = array<i32>} : memref<5x1xi32, #tpu.memory_space<vmem>>, vector<5x1xi32>,
    return
  }
}

</mosaic_0001>

<bundles_post_ra>
// kernel: tpu_custom_call.1
= control target key start
LH: loop header
LB: loop body
LE: loop exit
PB: predicated region body
PF: predicated region fallthrough
CT: control target
= control target key end

     0   :  { %6 = vsyncpa [#allocation3], 0  ;;  %s60_s9 = smov [#allocation2]   ;;  %s78_s0 = inlined_call_operand.hbm [shape: s32[5,5], index: 0, kind: input, shape index: {}]   ;;  %s79_s1 = inlined_call_operand.vmem [shape: s32[5,1], index: 1, kind: output, shape index: {}]  }
   0x1   :  { %s12_s8 = sshll.u32 %s78_s0, 4  ;;  %s14_s10 = sshll.u32 %s60_s9, 4  ;;  %s13_s8 = int_to_ptr.hbm [resolvable:$true] %s12_s8  ;;  %s15_s10 = int_to_ptr.vmem [resolvable:$true] %s14_s10 }
   0x2   :  { %17 = dma.hbm_to_vmem [thread:$0]  %s13_s8, 128, %s15_s10, [#allocation3]  }
   0x3   :  { %58 = dma.done.wait [#allocation3], 128  }
   0x4   :  { %59 = vsyncadd [#allocation3], 4294967168  ;;  %v22_v0 = vld [vmem:[#allocation2] sm:$0x1f]  ;;  %s61_s11 = smov 124   ;;  %vm25_vm0 = vcmask 4096  }
   0x5   :  { %23 = vrot.lane.b32.xlu0 %v22_v0, %s61_s11 }
  0x77   :  { %v24_v1 = vpop.permute.xlu0 %23 }
  0x78   :  { %26 = vst.msk [vmem:[%s79_s1] sm:$0x1f] %vm25_vm0, %v24_v1 }
  0x79   :  { %31 = vsyncpa [#allocation3], 1 }

</bundles_post_ra>
